<compile_context>
chip_gen: v7x
topology: tpu7x:2x2x1
jax: 0.10.0
libtpu: 0.0.40
codegen_flags: <defaults>
</compile_context>

<pallas_src>
import jax
import jax.numpy as jnp
from jax.experimental import pallas as pl
from jax.experimental.pallas import tpu as pltpu


# ----------------------------------------------------------------------------
# Tiling / budget helpers
# ----------------------------------------------------------------------------
def _vmem_budget_bytes():
    """~Half of physical VMEM (64 MiB on v5e/v6e, 32 MiB on v7x), clamped."""
    try:
        cap = int(pltpu.get_tpu_info().vmem_capacity_bytes)
    except Exception:  # older jax / abstract tracing: conservative default
        cap = 64 * 1024 * 1024
    return int(min(max(cap // 2, 32 * 1024 * 1024), 100 * 1024 * 1024))


def _pick_hw_tile(C, HW, target_block_bytes=2 * 1024 * 1024):
    """Largest multiple of 128 dividing HW with a ~target-sized (C, THW) block."""
    if HW % 128 != 0:
        return HW                                  # full extent (always legal)
    cap = max(128, (target_block_bytes // (4 * max(C, 1))) // 128 * 128)
    if HW <= cap:
        return HW
    thw = cap
    while HW % thw != 0:                           # terminates at 128 (divides HW)
        thw -= 128
    return thw


def _pick_slab_shape(B, C, HW):
    """Lane-dense 2-D view of the (B, C, HW) result for the clamp pass."""
    total = B * C * HW
    for lanes in (1024, 896, 768, 640, 512, 384, 256, 128):
        if total % lanes == 0:
            return total // lanes, lanes
    return B * C, HW                               # fallback (may be <128 lanes)


def _row_tile(R, L, target_block_bytes=4 * 1024 * 1024):
    cap = max(8, (target_block_bytes // (4 * L)) // 8 * 8)
    return R if R <= cap else cap


# ----------------------------------------------------------------------------
# Kernel 1: fused inner model + (pre-folded) CFG bias + sublane max/min partials
# ----------------------------------------------------------------------------
def _make_model_cfg_kernel(C, use_mxu):
    if use_mxu:
        # Large-C path: channel mixing on the MXU.
        def kernel(sigma_ref, wxT_ref, x_ref, feat_ref, o_ref, mm_ref):
            b = pl.program_id(0)
            xb = x_ref[0]                                            # (C, THW)
            h = jnp.dot(wxT_ref[...], xb, preferred_element_type=jnp.float32)
            comb = h * (1.0 + sigma_ref[b]) + feat_ref[0]            # (C,1) bias
            o_ref[0] = comb.astype(o_ref.dtype)
            mm_ref[0, 0, :] = jnp.max(comb, axis=0)                  # sublane-only reduce
            mm_ref[0, 1, :] = jnp.min(comb, axis=0)
        return kernel

    # Small-C path: a (C,C)@(C,THW) matmul would use <4/256 of the MXU and pay
    # systolic fill + result-FIFO latency each grid step -> unrolled VPU MACs
    # with the weight and fused CFG bias read as SMEM scalars instead.
    def kernel(sigma_ref, wflat_ref, x_ref, featflat_ref, o_ref, mm_ref):
        b = pl.program_id(0)
        s1 = 1.0 + sigma_ref[b]
        pmax = None
        pmin = None
        for co in range(C):                                          # static unroll
            acc = wflat_ref[co * C] * x_ref[0, 0, :]
            for ci in range(1, C):
                acc = acc + wflat_ref[co * C + ci] * x_ref[0, ci, :]
            row = acc * s1 + featflat_ref[b * C + co]                # fused CFG bias
            o_ref[0, co, :] = row.astype(o_ref.dtype)
            pmax = row if pmax is None else jnp.maximum(pmax, row)
            pmin = row if pmin is None else jnp.minimum(pmin, row)
        mm_ref[0, 0, :] = pmax
        mm_ref[0, 1, :] = pmin
    return kernel


def fused_model_cfg(x3, sigma, wxT, feat_comb):
    """x3: (B, C, HW) f32; sigma: (B,); wxT: (C, C); feat_comb: (B, C).

    Returns (combined (B, C, HW), mm (B, 2, HW)) where mm[:, 0] / mm[:, 1] are
    per-lane max / min over C; the cheap global reduce finishes in XLA.
    """
    B, C, HW = x3.shape
    use_mxu = C >= 64
    THW = _pick_hw_tile(C, HW)
    grid = (B, HW // THW)
    kernel = _make_model_cfg_kernel(C, use_mxu)

    if use_mxu:
        w_in = wxT.astype(jnp.float32)
        w_spec = pl.BlockSpec((C, C), lambda b, t: (0, 0))           # stays resident
        f_in = feat_comb.astype(jnp.float32).reshape(B, C, 1)
        f_spec = pl.BlockSpec((1, C, 1), lambda b, t: (b, 0, 0))
    else:
        w_in = wxT.astype(jnp.float32).reshape(-1)                   # (C*C,) scalars
        w_spec = pl.BlockSpec(memory_space=pltpu.SMEM)
        f_in = feat_comb.astype(jnp.float32).reshape(-1)             # (B*C,) scalars
        f_spec = pl.BlockSpec(memory_space=pltpu.SMEM)

    return pl.pallas_call(
        kernel,
        out_shape=(jax.ShapeDtypeStruct((B, C, HW), jnp.float32),
                   jax.ShapeDtypeStruct((B, 2, HW), jnp.float32)),
        grid=grid,
        in_specs=[
            pl.BlockSpec(memory_space=pltpu.SMEM),                   # sigma (B,)
            w_spec,
            pl.BlockSpec((1, C, THW), lambda b, t: (b, 0, t)),       # x tile
            f_spec,
        ],
        out_specs=(
            pl.BlockSpec((1, C, THW), lambda b, t: (b, 0, t)),
            pl.BlockSpec((1, 2, THW), lambda b, t: (b, 0, t)),
        ),
        compiler_params=pltpu.CompilerParams(
            dimension_semantics=("parallel", "parallel"),            # both TCs, even B=1
            vmem_limit_bytes=_vmem_budget_bytes(),
        ),
    )(sigma.astype(jnp.float32), w_in, x3, f_in)


# ----------------------------------------------------------------------------
# Kernel 2: cfg_apply_threshold clamp (lane-dense slab, precomputed bounds)
# ----------------------------------------------------------------------------
def _clamp_kernel(bounds_ref, r_ref, o_ref):
    # bounds_ref = [new_min, new_max] SMEM runtime scalars -> no recompilation as
    # the warmup threshold changes between calls, no per-step bound math.
    o_ref[...] = jnp.clip(r_ref[...], bounds_ref[0], bounds_ref[1])


def threshold_clamp(slab, new_min, new_max):
    R, L = slab.shape
    bounds = jnp.stack([new_min, new_max]).astype(jnp.float32)
    tr = _row_tile(R, L)
    return pl.pallas_call(
        _clamp_kernel,
        out_shape=jax.ShapeDtypeStruct((R, L), jnp.float32),
        grid=(pl.cdiv(R, tr),),
        in_specs=[pl.BlockSpec(memory_space=pltpu.SMEM),
                  pl.BlockSpec((tr, L), lambda i: (i, 0))],
        out_specs=pl.BlockSpec((tr, L), lambda i: (i, 0)),
        compiler_params=pltpu.CompilerParams(
            dimension_semantics=("parallel",),
            vmem_limit_bytes=_vmem_budget_bytes(),
        ),
        # TODO(synk): under jit with buffer donation, add input_output_aliases={1: 0}
        # so the clamp writes in place; unsafe to request in eager op-by-op mode.
    )(bounds, slab)


# ----------------------------------------------------------------------------
# CFGDenoiser wrapper (mirrors the PyTorch module's forward)
# ----------------------------------------------------------------------------
class CFGDenoiser:
    def __init__(self, wx, wc, threshold=0, warmup=0):
        # Synthetic inner-model params (stand-in for the UNet).
        self.wx = wx
        self.wxT = jnp.transpose(wx)          # pre-transposed channel-mixing weight
        self.wc = wc
        self.threshold = threshold
        self.warmup_max = warmup
        self.warmup = max(warmup / 10, 1)

    def __call__(self, x, sigma, uncond, cond, cond_scale):
        B, C, H, W = x.shape
        HW = H * W

        # No torch.cat([x]*2): both CFG branches share x/sigma and the x path.
        x3 = x.reshape(B, C, HW).astype(jnp.float32)     # free reshape, HW lane-dense

        # Hoisted cond processing + affine CFG fold (tiny XLA ops):
        #   uncond + (cond - uncond)*cond_scale  ->  one (B, C) bias.
        cs = jnp.asarray(cond_scale, jnp.float32)
        feat_u = jnp.mean(uncond, axis=1).astype(jnp.float32) @ self.wc
        feat_c = jnp.mean(cond, axis=1).astype(jnp.float32) @ self.wc
        feat_comb = feat_u + (feat_c - feat_u) * cs      # (B, C)

        combined, mm = fused_model_cfg(x3, sigma, self.wxT, feat_comb)

        # Host-side warmup bookkeeping (mutable Python state, like PyTorch).
        # NOTE: if __call__ is wrapped in jax.jit this becomes a trace-time
        # constant and the warmup ramp silently stops (kept eager on purpose).
        if self.warmup < self.warmup_max:
            thresh = max(1, 1 + (self.threshold - 1) * (self.warmup / self.warmup_max))
            self.warmup += 1
        else:
            thresh = self.threshold
        if thresh > self.threshold:
            thresh = self.threshold

        if thresh <= 0.0:
            # cfg_apply_threshold early return (Python-level, like PyTorch).
            return combined.reshape(B, C, H, W)

        # Global extrema from the small (B, 2, HW) sublane partials of kernel 1.
        maxval = jnp.max(mm[:, 0, :])
        minval = jnp.min(mm[:, 1, :])

        thr = jnp.float32(thresh)
        scale = jnp.float32(0.7)
        # Clamp bounds precomputed in XLA (runtime scalars). A side that does not
        # exceed the threshold keeps the data extreme -> no-op clip on that side,
        # which reproduces the PyTorch per-side branches exactly.
        new_max = jnp.where(maxval > thr,
                            jnp.minimum(jnp.maximum(jnp.float32(1.0), scale * maxval), thr),
                            maxval)
        new_min = jnp.where(minval < -thr,
                            jnp.maximum(jnp.minimum(jnp.float32(-1.0), scale * minval), -thr),
                            minval)

        # Lane-dense slab view for the elementwise clamp pass.
        R, L = _pick_slab_shape(B, C, HW)
        slab = combined.reshape(R, L)

        # Skip the full read+write pass when the clamp is an identity
        # (maxval < thresh and minval > -thresh) -- the PyTorch early return.
        skip = jnp.logical_and(maxval < thr, minval > -thr)
        out_slab = jax.lax.cond(
            skip,
            lambda s: s,
            lambda s: threshold_clamp(s, new_min, new_max),
            slab)

        return out_slab.reshape(B, C, H, W)


if __name__ == "__main__":
    key = jax.random.PRNGKey(0)
    B, C, H, W = 2, 4, 16, 16
    S, D = 8, 32
    k1, k2, k3, k4, k5, k6 = jax.random.split(key, 6)

    x = jax.random.normal(k1, (B, C, H, W), dtype=jnp.float32)
    sigma = jax.random.uniform(k2, (B,), dtype=jnp.float32, minval=0.1, maxval=1.0)
    uncond = jax.random.normal(k3, (B, S, D), dtype=jnp.float32)
    cond = jax.random.normal(k4, (B, S, D), dtype=jnp.float32)

    # Deterministic synthetic inner-model weights.
    wx = 0.5 * jax.random.normal(k5, (C, C), dtype=jnp.float32)
    wc = 0.1 * jax.random.normal(k6, (D, C), dtype=jnp.float32)

    cond_scale = 7.5
    denoiser = CFGDenoiser(wx, wc, threshold=1.0)
    out = denoiser(x, sigma, uncond, cond, cond_scale=cond_scale)
    out = jax.block_until_ready(out)
    assert out.shape == (B, C, H, W) and out.dtype == jnp.float32

    # Pure-JAX reference of the same forward (synthetic inner model + CFG +
    # cfg_apply_threshold) as a correctness sanity check.
    x3 = x.reshape(B, C, H * W)
    h = jnp.einsum("oc,bcn->bon", wx.T, x3)
    base = h * (1.0 + sigma)[:, None, None]
    fu = (jnp.mean(uncond, axis=1) @ wc)[:, :, None]
    fc = (jnp.mean(cond, axis=1) @ wc)[:, :, None]
    u_b, c_b = base + fu, base + fc
    res = u_b + (c_b - u_b) * cond_scale
    thr_ref = 1.0
    mx = float(jnp.max(res))
    mn = float(jnp.min(res))
    if not (mx < thr_ref and mn > -thr_ref):
        if mx > thr_ref:
            mx = min(max(1.0, 0.7 * mx), thr_ref)
        if mn < -thr_ref:
            mn = max(min(-1.0, 0.7 * mn), -thr_ref)
        res = jnp.clip(res, mn, mx)
    ref = res.reshape(B, C, H, W)
    assert jnp.allclose(out, ref, atol=1e-4, rtol=1e-4)

    print("KERNEL_OK")
</pallas_src>

<mosaic_0001>
module attributes {stable_mosaic.version = 11 : i64} {
  func.func @kernel(%arg0: i32, %arg1: i32, %arg2: memref<2xf32, #tpu.memory_space<smem>>, %arg3: memref<16xf32, #tpu.memory_space<smem>>, %arg4: memref<1x4x256xf32, #tpu.memory_space<vmem>>, %arg5: memref<8xf32, #tpu.memory_space<smem>>, %arg6: memref<1x4x256xf32, #tpu.memory_space<vmem>>, %arg7: memref<1x2x256xf32, #tpu.memory_space<vmem>>) attributes {dimension_semantics = [#tpu.dimension_semantics<parallel>, #tpu.dimension_semantics<parallel>], iteration_bounds = array<i64: 2, 1>, scalar_prefetch = 0 : i64, scratch_operands = 0 : i64, tpu.core_type = #tpu.core_type<tc>, window_params = [{transform_indices = @transform_0, window_bounds = array<i64: 2>}, {transform_indices = @transform_1, window_bounds = array<i64: 16>}, {transform_indices = @transform_2, window_bounds = array<i64: 1, 4, 256>}, {transform_indices = @transform_3, window_bounds = array<i64: 8>}, {transform_indices = @transform_4, window_bounds = array<i64: 1, 4, 256>}, {transform_indices = @transform_5, window_bounds = array<i64: 1, 2, 256>}]} {
    %0 = arith.index_cast %arg0 : i32 to index
    %1 = memref.load %arg2[%0] : memref<2xf32, #tpu.memory_space<smem>>
    %cst = arith.constant 1.000000e+00 : f32
    %2 = arith.addf %cst, %1 : f32
    %c0 = arith.constant 0 : index
    %3 = memref.load %arg3[%c0] : memref<16xf32, #tpu.memory_space<smem>>
    %c0_0 = arith.constant 0 : index
    %c0_1 = arith.constant 0 : index
    %c0_2 = arith.constant 0 : index
    %4 = vector.load %arg4[%c0_0, %c0_1, %c0_2] : memref<1x4x256xf32, #tpu.memory_space<vmem>>, vector<1x1x256xf32>
    %5 = vector.shape_cast %4 : vector<1x1x256xf32> to vector<256xf32>
    %6 = vector.broadcast %3 : f32 to vector<256xf32>
    %7 = arith.mulf %6, %5 : vector<256xf32>
    %c1 = arith.constant 1 : index
    %8 = memref.load %arg3[%c1] : memref<16xf32, #tpu.memory_space<smem>>
    %c0_3 = arith.constant 0 : index
    %c1_4 = arith.constant 1 : index
    %c0_5 = arith.constant 0 : index
    %9 = vector.load %arg4[%c0_3, %c1_4, %c0_5] : memref<1x4x256xf32, #tpu.memory_space<vmem>>, vector<1x1x256xf32>
    %10 = vector.shape_cast %9 : vector<1x1x256xf32> to vector<256xf32>
    %11 = vector.broadcast %8 : f32 to vector<256xf32>
    %12 = arith.mulf %11, %10 : vector<256xf32>
    %13 = arith.addf %7, %12 : vector<256xf32>
    %c2 = arith.constant 2 : index
    %14 = memref.load %arg3[%c2] : memref<16xf32, #tpu.memory_space<smem>>
    %c0_6 = arith.constant 0 : index
    %c2_7 = arith.constant 2 : index
    %c0_8 = arith.constant 0 : index
    %15 = vector.load %arg4[%c0_6, %c2_7, %c0_8] : memref<1x4x256xf32, #tpu.memory_space<vmem>>, vector<1x1x256xf32>
    %16 = vector.shape_cast %15 : vector<1x1x256xf32> to vector<256xf32>
    %17 = vector.broadcast %14 : f32 to vector<256xf32>
    %18 = arith.mulf %17, %16 : vector<256xf32>
    %19 = arith.addf %13, %18 : vector<256xf32>
    %c3 = arith.constant 3 : index
    %20 = memref.load %arg3[%c3] : memref<16xf32, #tpu.memory_space<smem>>
    %c0_9 = arith.constant 0 : index
    %c3_10 = arith.constant 3 : index
    %c0_11 = arith.constant 0 : index
    %21 = vector.load %arg4[%c0_9, %c3_10, %c0_11] : memref<1x4x256xf32, #tpu.memory_space<vmem>>, vector<1x1x256xf32>
    %22 = vector.shape_cast %21 : vector<1x1x256xf32> to vector<256xf32>
    %23 = vector.broadcast %20 : f32 to vector<256xf32>
    %24 = arith.mulf %23, %22 : vector<256xf32>
    %25 = arith.addf %19, %24 : vector<256xf32>
    %26 = vector.broadcast %2 : f32 to vector<256xf32>
    %27 = arith.mulf %25, %26 : vector<256xf32>
    %c4_i32 = arith.constant 4 : i32
    %28 = arith.muli %arg0, %c4_i32 : i32
    %c0_i32 = arith.constant 0 : i32
    %29 = arith.addi %28, %c0_i32 : i32
    %30 = arith.index_cast %29 : i32 to index
    %31 = memref.load %arg5[%30] : memref<8xf32, #tpu.memory_space<smem>>
    %32 = vector.broadcast %31 : f32 to vector<256xf32>
    %33 = arith.addf %27, %32 : vector<256xf32>
    %c0_12 = arith.constant 0 : index
    %c0_13 = arith.constant 0 : index
    %c0_14 = arith.constant 0 : index
    %34 = vector.load %arg6[%c0_12, %c0_13, %c0_14] : memref<1x4x256xf32, #tpu.memory_space<vmem>>, vector<1x1x256xf32>
    %35 = vector.shape_cast %34 : vector<1x1x256xf32> to vector<256xf32>
    %36 = vector.shape_cast %33 : vector<256xf32> to vector<1x1x256xf32>
    tpu.vector_store %arg6[%c0_12, %c0_13, %c0_14], %36 {strides = array<i32>} : memref<1x4x256xf32, #tpu.memory_space<vmem>>, vector<1x1x256xf32>,
    %c4 = arith.constant 4 : index
    %37 = memref.load %arg3[%c4] : memref<16xf32, #tpu.memory_space<smem>>
    %c0_15 = arith.constant 0 : index
    %c0_16 = arith.constant 0 : index
    %c0_17 = arith.constant 0 : index
    %38 = vector.load %arg4[%c0_15, %c0_16, %c0_17] : memref<1x4x256xf32, #tpu.memory_space<vmem>>, vector<1x1x256xf32>
    %39 = vector.shape_cast %38 : vector<1x1x256xf32> to vector<256xf32>
    %40 = vector.broadcast %37 : f32 to vector<256xf32>
    %41 = arith.mulf %40, %39 : vector<256xf32>
    %c5 = arith.constant 5 : index
    %42 = memref.load %arg3[%c5] : memref<16xf32, #tpu.memory_space<smem>>
    %c0_18 = arith.constant 0 : index
    %c1_19 = arith.constant 1 : index
    %c0_20 = arith.constant 0 : index
    %43 = vector.load %arg4[%c0_18, %c1_19, %c0_20] : memref<1x4x256xf32, #tpu.memory_space<vmem>>, vector<1x1x256xf32>
    %44 = vector.shape_cast %43 : vector<1x1x256xf32> to vector<256xf32>
    %45 = vector.broadcast %42 : f32 to vector<256xf32>
    %46 = arith.mulf %45, %44 : vector<256xf32>
    %47 = arith.addf %41, %46 : vector<256xf32>
    %c6 = arith.constant 6 : index
    %48 = memref.load %arg3[%c6] : memref<16xf32, #tpu.memory_space<smem>>
    %c0_21 = arith.constant 0 : index
    %c2_22 = arith.constant 2 : index
    %c0_23 = arith.constant 0 : index
    %49 = vector.load %arg4[%c0_21, %c2_22, %c0_23] : memref<1x4x256xf32, #tpu.memory_space<vmem>>, vector<1x1x256xf32>
    %50 = vector.shape_cast %49 : vector<1x1x256xf32> to vector<256xf32>
    %51 = vector.broadcast %48 : f32 to vector<256xf32>
    %52 = arith.mulf %51, %50 : vector<256xf32>
    %53 = arith.addf %47, %52 : vector<256xf32>
    %c7 = arith.constant 7 : index
    %54 = memref.load %arg3[%c7] : memref<16xf32, #tpu.memory_space<smem>>
    %c0_24 = arith.constant 0 : index
    %c3_25 = arith.constant 3 : index
    %c0_26 = arith.constant 0 : index
    %55 = vector.load %arg4[%c0_24, %c3_25, %c0_26] : memref<1x4x256xf32, #tpu.memory_space<vmem>>, vector<1x1x256xf32>
    %56 = vector.shape_cast %55 : vector<1x1x256xf32> to vector<256xf32>
    %57 = vector.broadcast %54 : f32 to vector<256xf32>
    %58 = arith.mulf %57, %56 : vector<256xf32>
    %59 = arith.addf %53, %58 : vector<256xf32>
    %60 = vector.broadcast %2 : f32 to vector<256xf32>
    %61 = arith.mulf %59, %60 : vector<256xf32>
    %c4_i32_27 = arith.constant 4 : i32
    %62 = arith.muli %arg0, %c4_i32_27 : i32
    %c1_i32 = arith.constant 1 : i32
    %63 = arith.addi %62, %c1_i32 : i32
    %64 = arith.index_cast %63 : i32 to index
    %65 = memref.load %arg5[%64] : memref<8xf32, #tpu.memory_space<smem>>
    %66 = vector.broadcast %65 : f32 to vector<256xf32>
    %67 = arith.addf %61, %66 : vector<256xf32>
    %c0_28 = arith.constant 0 : index
    %c1_29 = arith.constant 1 : index
    %c0_30 = arith.constant 0 : index
    %68 = vector.load %arg6[%c0_28, %c1_29, %c0_30] : memref<1x4x256xf32, #tpu.memory_space<vmem>>, vector<1x1x256xf32>
    %69 = vector.shape_cast %68 : vector<1x1x256xf32> to vector<256xf32>
    %70 = vector.shape_cast %67 : vector<256xf32> to vector<1x1x256xf32>
    tpu.vector_store %arg6[%c0_28, %c1_29, %c0_30], %70 {strides = array<i32>} : memref<1x4x256xf32, #tpu.memory_space<vmem>>, vector<1x1x256xf32>,
    %71 = arith.maximumf %33, %67 : vector<256xf32>
    %72 = arith.minimumf %33, %67 : vector<256xf32>
    %c8 = arith.constant 8 : index
    %73 = memref.load %arg3[%c8] : memref<16xf32, #tpu.memory_space<smem>>
    %c0_31 = arith.constant 0 : index
    %c0_32 = arith.constant 0 : index
    %c0_33 = arith.constant 0 : index
    %74 = vector.load %arg4[%c0_31, %c0_32, %c0_33] : memref<1x4x256xf32, #tpu.memory_space<vmem>>, vector<1x1x256xf32>
    %75 = vector.shape_cast %74 : vector<1x1x256xf32> to vector<256xf32>
    %76 = vector.broadcast %73 : f32 to vector<256xf32>
    %77 = arith.mulf %76, %75 : vector<256xf32>
    %c9 = arith.constant 9 : index
    %78 = memref.load %arg3[%c9] : memref<16xf32, #tpu.memory_space<smem>>
    %c0_34 = arith.constant 0 : index
    %c1_35 = arith.constant 1 : index
    %c0_36 = arith.constant 0 : index
    %79 = vector.load %arg4[%c0_34, %c1_35, %c0_36] : memref<1x4x256xf32, #tpu.memory_space<vmem>>, vector<1x1x256xf32>
    %80 = vector.shape_cast %79 : vector<1x1x256xf32> to vector<256xf32>
    %81 = vector.broadcast %78 : f32 to vector<256xf32>
    %82 = arith.mulf %81, %80 : vector<256xf32>
    %83 = arith.addf %77, %82 : vector<256xf32>
    %c10 = arith.constant 10 : index
    %84 = memref.load %arg3[%c10] : memref<16xf32, #tpu.memory_space<smem>>
    %c0_37 = arith.constant 0 : index
    %c2_38 = arith.constant 2 : index
    %c0_39 = arith.constant 0 : index
    %85 = vector.load %arg4[%c0_37, %c2_38, %c0_39] : memref<1x4x256xf32, #tpu.memory_space<vmem>>, vector<1x1x256xf32>
    %86 = vector.shape_cast %85 : vector<1x1x256xf32> to vector<256xf32>
    %87 = vector.broadcast %84 : f32 to vector<256xf32>
    %88 = arith.mulf %87, %86 : vector<256xf32>
    %89 = arith.addf %83, %88 : vector<256xf32>
    %c11 = arith.constant 11 : index
    %90 = memref.load %arg3[%c11] : memref<16xf32, #tpu.memory_space<smem>>
    %c0_40 = arith.constant 0 : index
    %c3_41 = arith.constant 3 : index
    %c0_42 = arith.constant 0 : index
    %91 = vector.load %arg4[%c0_40, %c3_41, %c0_42] : memref<1x4x256xf32, #tpu.memory_space<vmem>>, vector<1x1x256xf32>
    %92 = vector.shape_cast %91 : vector<1x1x256xf32> to vector<256xf32>
    %93 = vector.broadcast %90 : f32 to vector<256xf32>
    %94 = arith.mulf %93, %92 : vector<256xf32>
    %95 = arith.addf %89, %94 : vector<256xf32>
    %96 = vector.broadcast %2 : f32 to vector<256xf32>
    %97 = arith.mulf %95, %96 : vector<256xf32>
    %c4_i32_43 = arith.constant 4 : i32
    %98 = arith.muli %arg0, %c4_i32_43 : i32
    %c2_i32 = arith.constant 2 : i32
    %99 = arith.addi %98, %c2_i32 : i32
    %100 = arith.index_cast %99 : i32 to index
    %101 = memref.load %arg5[%100] : memref<8xf32, #tpu.memory_space<smem>>
    %102 = vector.broadcast %101 : f32 to vector<256xf32>
    %103 = arith.addf %97, %102 : vector<256xf32>
    %c0_44 = arith.constant 0 : index
    %c2_45 = arith.constant 2 : index
    %c0_46 = arith.constant 0 : index
    %104 = vector.load %arg6[%c0_44, %c2_45, %c0_46] : memref<1x4x256xf32, #tpu.memory_space<vmem>>, vector<1x1x256xf32>
    %105 = vector.shape_cast %104 : vector<1x1x256xf32> to vector<256xf32>
    %106 = vector.shape_cast %103 : vector<256xf32> to vector<1x1x256xf32>
    tpu.vector_store %arg6[%c0_44, %c2_45, %c0_46], %106 {strides = array<i32>} : memref<1x4x256xf32, #tpu.memory_space<vmem>>, vector<1x1x256xf32>,
    %107 = arith.maximumf %71, %103 : vector<256xf32>
    %108 = arith.minimumf %72, %103 : vector<256xf32>
    %c12 = arith.constant 12 : index
    %109 = memref.load %arg3[%c12] : memref<16xf32, #tpu.memory_space<smem>>
    %c0_47 = arith.constant 0 : index
    %c0_48 = arith.constant 0 : index
    %c0_49 = arith.constant 0 : index
    %110 = vector.load %arg4[%c0_47, %c0_48, %c0_49] : memref<1x4x256xf32, #tpu.memory_space<vmem>>, vector<1x1x256xf32>
    %111 = vector.shape_cast %110 : vector<1x1x256xf32> to vector<256xf32>
    %112 = vector.broadcast %109 : f32 to vector<256xf32>
    %113 = arith.mulf %112, %111 : vector<256xf32>
    %c13 = arith.constant 13 : index
    %114 = memref.load %arg3[%c13] : memref<16xf32, #tpu.memory_space<smem>>
    %c0_50 = arith.constant 0 : index
    %c1_51 = arith.constant 1 : index
    %c0_52 = arith.constant 0 : index
    %115 = vector.load %arg4[%c0_50, %c1_51, %c0_52] : memref<1x4x256xf32, #tpu.memory_space<vmem>>, vector<1x1x256xf32>
    %116 = vector.shape_cast %115 : vector<1x1x256xf32> to vector<256xf32>
    %117 = vector.broadcast %114 : f32 to vector<256xf32>
    %118 = arith.mulf %117, %116 : vector<256xf32>
    %119 = arith.addf %113, %118 : vector<256xf32>
    %c14 = arith.constant 14 : index
    %120 = memref.load %arg3[%c14] : memref<16xf32, #tpu.memory_space<smem>>
    %c0_53 = arith.constant 0 : index
    %c2_54 = arith.constant 2 : index
    %c0_55 = arith.constant 0 : index
    %121 = vector.load %arg4[%c0_53, %c2_54, %c0_55] : memref<1x4x256xf32, #tpu.memory_space<vmem>>, vector<1x1x256xf32>
    %122 = vector.shape_cast %121 : vector<1x1x256xf32> to vector<256xf32>
    %123 = vector.broadcast %120 : f32 to vector<256xf32>
    %124 = arith.mulf %123, %122 : vector<256xf32>
    %125 = arith.addf %119, %124 : vector<256xf32>
    %c15 = arith.constant 15 : index
    %126 = memref.load %arg3[%c15] : memref<16xf32, #tpu.memory_space<smem>>
    %c0_56 = arith.constant 0 : index
    %c3_57 = arith.constant 3 : index
    %c0_58 = arith.constant 0 : index
    %127 = vector.load %arg4[%c0_56, %c3_57, %c0_58] : memref<1x4x256xf32, #tpu.memory_space<vmem>>, vector<1x1x256xf32>
    %128 = vector.shape_cast %127 : vector<1x1x256xf32> to vector<256xf32>
    %129 = vector.broadcast %126 : f32 to vector<256xf32>
    %130 = arith.mulf %129, %128 : vector<256xf32>
    %131 = arith.addf %125, %130 : vector<256xf32>
    %132 = vector.broadcast %2 : f32 to vector<256xf32>
    %133 = arith.mulf %131, %132 : vector<256xf32>
    %c4_i32_59 = arith.constant 4 : i32
    %134 = arith.muli %arg0, %c4_i32_59 : i32
    %c3_i32 = arith.constant 3 : i32
    %135 = arith.addi %134, %c3_i32 : i32
    %136 = arith.index_cast %135 : i32 to index
    %137 = memref.load %arg5[%136] : memref<8xf32, #tpu.memory_space<smem>>
    %138 = vector.broadcast %137 : f32 to vector<256xf32>
    %139 = arith.addf %133, %138 : vector<256xf32>
    %c0_60 = arith.constant 0 : index
    %c3_61 = arith.constant 3 : index
    %c0_62 = arith.constant 0 : index
    %140 = vector.load %arg6[%c0_60, %c3_61, %c0_62] : memref<1x4x256xf32, #tpu.memory_space<vmem>>, vector<1x1x256xf32>
    %141 = vector.shape_cast %140 : vector<1x1x256xf32> to vector<256xf32>
    %142 = vector.shape_cast %139 : vector<256xf32> to vector<1x1x256xf32>
    tpu.vector_store %arg6[%c0_60, %c3_61, %c0_62], %142 {strides = array<i32>} : memref<1x4x256xf32, #tpu.memory_space<vmem>>, vector<1x1x256xf32>,
    %143 = arith.maximumf %107, %139 : vector<256xf32>
    %144 = arith.minimumf %108, %139 : vector<256xf32>
    %c0_63 = arith.constant 0 : index
    %c0_64 = arith.constant 0 : index
    %c0_65 = arith.constant 0 : index
    %145 = vector.load %arg7[%c0_63, %c0_64, %c0_65] : memref<1x2x256xf32, #tpu.memory_space<vmem>>, vector<1x1x256xf32>
    %146 = vector.shape_cast %145 : vector<1x1x256xf32> to vector<256xf32>
    %147 = vector.shape_cast %143 : vector<256xf32> to vector<1x1x256xf32>
    tpu.vector_store %arg7[%c0_63, %c0_64, %c0_65], %147 {strides = array<i32>} : memref<1x2x256xf32, #tpu.memory_space<vmem>>, vector<1x1x256xf32>,
    %c0_66 = arith.constant 0 : index
    %c1_67 = arith.constant 1 : index
    %c0_68 = arith.constant 0 : index
    %148 = vector.load %arg7[%c0_66, %c1_67, %c0_68] : memref<1x2x256xf32, #tpu.memory_space<vmem>>, vector<1x1x256xf32>
    %149 = vector.shape_cast %148 : vector<1x1x256xf32> to vector<256xf32>
    %150 = vector.shape_cast %144 : vector<256xf32> to vector<1x1x256xf32>
    tpu.vector_store %arg7[%c0_66, %c1_67, %c0_68], %150 {strides = array<i32>} : memref<1x2x256xf32, #tpu.memory_space<vmem>>, vector<1x1x256xf32>,
    return
  }
  func.func @transform_0(%arg0: i32, %arg1: i32) -> i32 {
    %c0_i32 = arith.constant 0 : i32
    %c0_i32_0 = arith.constant 0 : i32
    return %c0_i32 : i32
  }
  func.func @transform_1(%arg0: i32, %arg1: i32) -> i32 {
    %c0_i32 = arith.constant 0 : i32
    %c0_i32_0 = arith.constant 0 : i32
    return %c0_i32 : i32
  }
  func.func @transform_2(%arg0: i32, %arg1: i32) -> (i32, i32, i32) {
    %c0_i32 = arith.constant 0 : i32
    %c0_i32_0 = arith.constant 0 : i32
    return %arg0, %c0_i32, %arg1 : i32, i32, i32
  }
  func.func @transform_3(%arg0: i32, %arg1: i32) -> i32 {
    %c0_i32 = arith.constant 0 : i32
    %c0_i32_0 = arith.constant 0 : i32
    return %c0_i32 : i32
  }
  func.func @transform_4(%arg0: i32, %arg1: i32) -> (i32, i32, i32) {
    %c0_i32 = arith.constant 0 : i32
    %c0_i32_0 = arith.constant 0 : i32
    return %arg0, %c0_i32, %arg1 : i32, i32, i32
  }
  func.func @transform_5(%arg0: i32, %arg1: i32) -> (i32, i32, i32) {
    %c0_i32 = arith.constant 0 : i32
    %c0_i32_0 = arith.constant 0 : i32
    return %arg0, %c0_i32, %arg1 : i32, i32, i32
  }
}

</mosaic_0001>

<bundles_post_ra>
// kernel: tpu_custom_call.1
= control target key start
LH: loop header
LB: loop body
LE: loop exit
PB: predicated region body
PF: predicated region fallthrough
CT: control target
= control target key end

     0   :  { %s1412_s0 = inlined_call_operand.hbm [shape: f32[2], index: 0, kind: input, shape index: {}]   ;;  %s1413_s1 = inlined_call_operand.vmem [shape: f32[16], index: 1, kind: input, shape index: {}]   ;;  %s1414_s2 = inlined_call_operand.hbm [shape: f32[2,4,256], index: 2, kind: input, shape index: {}]   ;;  %s1415_s3 = inlined_call_operand.vmem [shape: f32[8], index: 3, kind: input, shape index: {}]   ;;  %s1416_s4 = inlined_call_operand.hbm [shape: f32[2,4,256], index: 4, kind: output, shape index: {0}]   ;;  %s1417_s5 = inlined_call_operand.hbm [shape: f32[2,2,256], index: 5, kind: output, shape index: {1}]  }
   0x1   :  { %1423 = sst [smem:[#allocation20_spill]] %s1412_s0 }
   0x2   :  { %11 = vsyncpa [#allocation5], 0 }
   0x3   :  { %12 = vsyncpa [#allocation6], 0 }
   0x4   :  { %13 = vsyncpa [#allocation3], 0 }
   0x5   :  { %15 = vsyncpa [#allocation3 + $0x1], 0 }
   0x6   :  { %16 = vsyncpa [#allocation10], 0 }
   0x7   :  { %17 = vsyncpa [#allocation4], 0 }
   0x8   :  { %19 = vsyncpa [#allocation4 + $0x1], 0 }
   0x9   :  { %20 = vsyncpa [#allocation13], 0 }
   0xa   :  { %22 = vsyncpa [#allocation13 + $0x1], 0  ;;  %s1021_s18 = smov 0   ;;  %s1023_s19 = smov 0  }
   0xb   :  { %s1025_s20 = smov 0   ;;  %s1027_s21 = smov 0  }
   0xc   :  { %s1029_s22 = smov 0   ;;  %s1031_s23 = smov 0  }
   0xd LB: > { %s626_s24 = sadd.s32 4294967295, %s983_s23   ;;  %s627_s25 = sadd.s32 4294967294, %s983_s23   ;;  %s983_s23 = sphi %s1031_s23, %s28_s23   ;;  %s979_s22 = sphi %s1029_s22, %s1446_s22   ;;  %s975_s21 = sphi %s1027_s21, %s1445_s21   ;;  %s971_s20 = sphi %s1025_s20, %s1444_s20   ;;  %s967_s19 = sphi %s1023_s19, %s1443_s19   ;;  %s963_s18 = sphi %s1021_s18, %s1442_s18  }
   0xe   : > { %p104_p0 = scmp.ne.s32.totalorder %s967_s19, %s963_s18  ;;  %p1055_p1 = scmp.eq.s32.totalorder %s626_s24, 0 }
   0xf   : > { %p1059_p2 = scmp.eq.s32.totalorder %s626_s24, 1  ;;  %p157_p3 = scmp.eq.s32.totalorder %s627_s25, 1 }
  0x10   : > { %s1424_s26 = scalar_select %p1055_p1, 1, 0 }
  0x11   : > { %p1065_p4 = por %p1055_p1, %p104_p0  ;;  %p628_p5 = scmp.ge.s32.totalorder %s983_s23, 1 }
  0x12   : > { %p1070_p6 = por %p157_p3, %p104_p0  ;;  %p192_p7 = scmp.lt.s32.totalorder %s983_s23, 3 }
  0x13   : > { %s1426_s28 = scalar_select %p1065_p4, 1, 0 }
  0x14   : > { %s1427_s29 = scalar_select %p1070_p6, 1, 0 }
  0x15   : > { %p1075_p8 = pnand %p628_p5, %p192_p7  ;;  %s214_s8 = sshll.u32 %s1413_s1, 4  ;;  %s215_s8 = int_to_ptr.vmem [resolvable:$true] %s214_s8 }
  0x16   : > { %s225_s11 = sshll.u32 %s1415_s3, 4  ;;  %s1430_s0 = sld [smem:[#allocation20_spill]]  ;;  %s1094_s11 = int_to_ptr.vmem [resolvable:$true] %s225_s11 }
  0x17   : > { %p704_p10 = pneg %p1075_p8 }
  0x19   : > { %p1090_p11 = pnand %p704_p10, %p1055_p1 }
  0x1b   : > { %p786_p13 = pneg %p1090_p11 }
  0x1c   : > { %s784_s15 = scalar_lea.hbm %s1430_s0, 16 }
  0x1d   : > { %p785_p12 = scmp.ne.s32.totalorder %s1430_s0, %s784_s15  ;;  %p791_p5 = scmp.lt.u32.totalorder %s784_s15, %s1430_s0 }
  0x1f   : > { %p787_p0 = pnand %p786_p13, %p785_p12 }
  0x21   : > { %p788_p3 = pneg %p787_p0 }
  0x23   : > { %p793_p7 = pnand %p791_p5, %p788_p3 }
  0x25   : > { %796 = shalt.err (!%p793_p7)
}
  0x26   : > { %s985_s6 = smov [#allocation2]   ;;  %s797_s10 = scalar_lea.vmem %s215_s8, 16 }
  0x27   : > { %707 = dma.hbm_to_smem (!%p1090_p11), %s1430_s0, 16, %s985_s6, [#allocation5]  }
  0x28   : > { %p798_p10 = scmp.ne.s32.totalorder %s215_s8, %s797_s10  ;;  %p805_p9 = scmp.lt.s32.totalorder %s215_s8, %s215_s8 }
  0x29   : > { %p806_p6 = scmp.lt.s32.totalorder %s797_s10, %s797_s10 }
  0x2a   : > { %p800_p12 = pnand %p798_p10, %p786_p13 }
  0x2b   : > { %p807_p4 = por %p806_p6, %p805_p9 }
  0x2c   : > { %p801_p0 = pneg %p800_p12 }
  0x2e   : > { %p808_p1 = pnand %p807_p4, %p801_p0 }
  0x30   : > { %811 = shalt.err (!%p808_p1)
}
  0x31   : > { %s986_s13 = smov [#allocation7]   ;;  %s812_s14 = scalar_lea.vmem %s1094_s11, 16 }
  0x32   : > { %710 = dma.vmem_to_smem (!%p1090_p11), %s215_s8, 16, %s986_s13, [#allocation6]  }
  0x33   : > { %p813_p3 = scmp.ne.s32.totalorder %s1094_s11, %s812_s14  ;;  %p820_p10 = scmp.lt.s32.totalorder %s1094_s11, %s1094_s11 }
  0x34   : > { %p821_p12 = scmp.lt.s32.totalorder %s812_s14, %s812_s14 }
  0x35   : > { %p815_p5 = pnand %p813_p3, %p786_p13 }
  0x36   : > { %p822_p6 = por %p821_p12, %p820_p10 }
  0x37   : > { %p816_p7 = pneg %p815_p5 }
  0x39   : > { %p823_p4 = pnand %p822_p6, %p816_p7 }
  0x3b   : > { %826 = shalt.err (!%p823_p4)
}
  0x3c   : > { %s987_s15 = smov [#allocation9]   ;;  %s40_s8 = sadd.s32 1, %s979_s22 }
  0x3d   : > { %713 = dma.vmem_to_smem (!%p1090_p11), %s1094_s11, 16, %s987_s15, [#allocation10]  }
  0x3e   : > { %p42_p1 = scmp.ge.s32.totalorder %s40_s8, 2  ;;  %s91_s16 = sadd.s32 1, %s971_s20 }
  0x3f   : > { %p98_p9 = scmp.ne.s32.totalorder %s971_s20, %s967_s19  ;;  %p99_p13 = scmp.eq.s32.totalorder %s983_s23, 0 }
  0x40   : > { %s1448_s8 = smov (%p42_p1, %s40_s8), 0  ;;  %p728_p11 = scmp.lt.s32.totalorder %s983_s23, 2 }
  0x41   : > { %p1137_p0 = por %p99_p13, %p98_p9  ;;  %p1143_p3 = por %p1059_p2, %p98_p9 }
  0x42   : > { %s86_s24 = ssub.s32 %s979_s22, %s1448_s8  ;;  %s236_s11 = sand.u32 1, %s971_s20  }
  0x43   : > { %s1432_s17 = scalar_select %p1143_p3, 1, 0 }
  0x44   : > { %p89_p5 = scmp.eq.s32.totalorder %s86_s24, 0  ;;  %s633_s25 = sshll.u32 %s236_s11, 3 }
  0x45   : > { %s683_s7 = sshll.u32 %s979_s22, 7  ;;  %s240_s27 = scalar_lea.vmem [#allocation8], %s633_s25 }
  0x46   : > { %s1152_s6 = scalar_select %p89_p5, %s971_s20, %s91_s16  }
  0x47   : > { %s1158_s13 = scalar_lea.hbm %s1414_s2, %s683_s7  ;;  %s250_s14 = sshll.u32 %s240_s27, 4  ;;  %s1160_s14 = int_to_ptr.vmem [resolvable:$true] %s250_s14 }
  0x48   : > { %p1164_p2 = pnand %p728_p11, %p1137_p0  ;;  %s237_s16 = scalar_lea.sflag [#allocation3], %s236_s11 }
  0x49   : > { %s827_s24 = scalar_lea.hbm %s1158_s13, 128  ;;  %s832_s9 = scalar_lea.hbm %s1414_s2, 256 }
  0x4a   : > { %p828_p7 = scmp.ne.s32.totalorder %s1158_s13, %s827_s24  ;;  %p829_p10 = pneg %p1164_p2 }
  0x4b   : > { %p833_p4 = scmp.lt.u32.totalorder %s1158_s13, %s1414_s2  ;;  %p834_p1 = scmp.lt.u32.totalorder %s832_s9, %s827_s24 }
  0x4c   : > { %p830_p12 = pnand %p829_p10, %p828_p7  ;;  %p836_p13 = scmp.lt.u32.totalorder %s827_s24, %s1158_s13 }
  0x4d   : > { %p835_p9 = por %p834_p1, %p833_p4 }
  0x4e   : > { %p831_p6 = pneg %p830_p12 }
  0x4f   : > { %p837_p0 = por %p836_p13, %p835_p9 }
  0x51   : > { %p838_p11 = pnand %p837_p0, %p831_p6 }
  0x53   : > { %841 = shalt.err (!%p838_p11)
}
  0x54   : > { %s842_s11 = scalar_lea.vmem %s1160_s14, 128  ;;  %s988_s27 = smov [#allocation8]  }
  0x55   : > { %p843_p5 = scmp.ne.s32.totalorder %s1160_s14, %s842_s11  ;;  %s847_s25 = sshll.u32 %s988_s27, 4  ;;  %s848_s25 = int_to_ptr.vmem [resolvable:$false] %s847_s25 }
  0x56   : > { %s849_s7 = scalar_lea.vmem %s848_s25, 256  ;;  %p850_p3 = scmp.lt.s32.totalorder %s1160_s14, %s848_s25 }
  0x57   : > { %p845_p7 = pnand %p843_p5, %p829_p10  ;;  %p851_p4 = scmp.lt.s32.totalorder %s849_s7, %s842_s11 }
  0x59   : > { %p846_p12 = pneg %p845_p7  ;;  %p852_p1 = por %p851_p4, %p850_p3 }
  0x5b   : > { %p853_p9 = pnand %p852_p1, %p846_p12 }
  0x5d   : > { %856 = shalt.err (!%p853_p9)
}
  0x5e   : > { %717 = dma.hbm_to_vmem [thread:$0]  (!%p1164_p2), %s1158_s13, 128, %s1160_s14, %s237_s16  }
  0x5f   : > { %259 = sbr.rel (%p1075_p8) target bundleno = 180 (0xb4), region = 36  ;;  %p1434_p10 = scmp.ne.s32.totalorder (!%p1075_p8), %s1424_s26, 0 }
  0x66   : > { %938 = dma.done.wait (%p1434_p10), [#allocation5], 16  }
  0x67   : > { %940 = vsyncadd (%p1434_p10), [#allocation5], 4294967280 }
  0x68   : > { %942 = dma.done.wait (%p1434_p10), [#allocation6], 16  }
  0x69   : > { %944 = vsyncadd (%p1434_p10), [#allocation6], 4294967280  ;;  %s1204_s15 = sand.u32 1, %s967_s19   ;;  %p1435_p8 = scmp.ne.s32.totalorder %s1426_s28, 0 }
  0x6a   : > { %s1422_s30 = sshll.u32 %s1204_s15, 3  ;;  %s270_s13 = scalar_lea.sflag [#allocation3], %s1204_s15 }
  0x6b   : > { %s1210_s14 = scalar_lea.vmem [#allocation8], %s1422_s30 }
  0x6c   : > { %946 = dma.done.wait (%p1435_p8), %s270_s13, 128  }
  0x6d   : > { %948 = vsyncadd (%p1435_p8), %s270_s13, 4294967168 }
  0x6e   : > { %950 = dma.done.wait (%p1434_p10), [#allocation10], 16  }
  0x6f   : > { %952 = vsyncadd (%p1434_p10), [#allocation10], 4294967280 }
  0x70   : > { %282 = sfence }
  0x71   : > { %s1221_s16 = sld [smem:[#allocation2 + %s975_s21]]  ;;  %v316_v0 = vld [vmem:[%s1210_s14] ss:$4 sm:$0x3]  ;;  %s1225_s10 = sshll.u32 %s975_s21, 2  ;;  %v343_v12 = vlaneseq }
  0x72   : > { %s315_s24 = sld [smem:[#allocation7]]  ;;  %s643_s9 = sld [smem:[#allocation7 + $0x1]]  ;;  %v644_v1 = vld [vmem:[%s1210_s14 + $0x1] ss:$4 sm:$0x3] }
  0x73   : > { %s645_s12 = sld [smem:[#allocation7 + $0x2]]  ;;  %s647_s28 = sld [smem:[#allocation7 + $0x3]]  ;;  %v646_v2 = vld [vmem:[%s1210_s14 + $0x2] ss:$4 sm:$0x3]  ;;  %vm1263_vm0 = vcmp.lt.s32.totalorder %v343_v12, 256 }
  0x74   : > { %s650_s26 = sld [smem:[#allocation7 + $0x4]]  ;;  %s1228_s11 = sld [smem:[#allocation7 + $0x5]]  ;;  %v648_v5 = vld [vmem:[%s1210_s14 + $0x3] ss:$4 sm:$0x3] }
  0x75   : > { %s1231_s27 = sld [smem:[#allocation7 + $0x6]]  ;;  %s1237_s7 = sld [smem:[#allocation7 + $0x7]]  ;;  %v349_v9 = vld [vmem:[%s1210_s14] ss:$4 sm:$0x3] }
  0x76   : > { %s1235_s25 = sld [smem:[#allocation9 + %s1225_s10]]  ;;  %s368_s13 = sadd.s32 1, %s1225_s10  ;;  %v652_v13 = vld [vmem:[%s1210_s14 + $0x1] ss:$4 sm:$0x3] }
  0x77   : > { %s1241_s30 = sld [smem:[#allocation7 + $0x8]]  ;;  %s314_s0 = sadd.f32 1.0, %s1221_s16  ;;  %v654_v17 = vld [vmem:[%s1210_s14 + $0x2] ss:$4 sm:$0x3] }
  0x78   : > { %v317_v3 = vstv %s315_s24  ;;  %v322_v4 = vstv %s643_s9  ;;  %s1245_s24 = sld [smem:[#allocation7 + $0x9]]  ;;  %s1248_s9 = sld [smem:[#allocation7 + $0xa]]  ;;  %v656_v20 = vld [vmem:[%s1210_s14 + $0x3] ss:$4 sm:$0x3] }
  0x79   : > { %v318_v6 = vmul.f32 %v317_v3, %v316_v0  ;;  %v323_v7 = vmul.f32 %v644_v1, %v322_v4  ;;  %v328_v8 = vstv %s645_s12  ;;  %v334_v11 = vstv %s647_s28  ;;  %s1252_s16 = sld [smem:[#allocation9 + %s368_s13]]  ;;  %v377_v24 = vld [vmem:[%s1210_s14] ss:$4 sm:$0x3]  ;;  %s396_s28 = sadd.s32 2, %s1225_s10 }
  0x7a   : > { %v329_v10 = vmul.f32 %v646_v2, %v328_v8  ;;  %v335_v15 = vmul.f32 %v648_v5, %v334_v11  ;;  %v350_v16 = vstv %s650_s26  ;;  %v354_v19 = vstv %s1228_s11  ;;  %s1254_s12 = sld [smem:[#allocation7 + $0xb]]  ;;  %s1259_s26 = sld [smem:[#allocation7 + $0xc]]  ;;  %v660_v29 = vld [vmem:[%s1210_s14 + $0x1] ss:$4 sm:$0x3] }
  0x7b   : > { %v324_v14 = vadd.f32 %v323_v7, %v318_v6  ;;  %v351_v18 = vmul.f32 %v350_v16, %v349_v9  ;;  %v355_v22 = vmul.f32 %v652_v13, %v354_v19  ;;  %v359_v23 = vstv %s1231_s27  ;;  %s1269_s11 = sld [smem:[#allocation7 + $0xd]]  ;;  %v662_v34 = vld [vmem:[%s1210_s14 + $0x2] ss:$4 sm:$0x3]  ;;  %p1439_p2 = scmp.ne.s32.totalorder %s1432_s17, 0 }
  0x7c   : > { %v1261_v25 = vstv %s314_s0  ;;  %v360_v27 = vmul.f32 %v654_v17, %v359_v23  ;;  %v364_v28 = vstv %s1237_s7  ;;  %s1273_s0 = sld [smem:[#allocation7 + $0xe]]  ;;  %v341_v35 = vstv %s1235_s25  ;;  %v664_v38 = vld [vmem:[%s1210_s14 + $0x3] ss:$4 sm:$0x3]  ;;  %s1280_s7 = sld [smem:[#allocation7 + $0xf]] }
  0x7d   : > { %v330_v21 = vadd.f32 %v329_v10, %v324_v14  ;;  %v356_v31 = vadd.f32 %v355_v22, %v351_v18  ;;  %v365_v32 = vmul.f32 %v656_v20, %v364_v28  ;;  %v378_v33 = vstv %s1241_s30  ;;  %s1278_s27 = sld [smem:[#allocation9 + %s396_s28]]  ;;  %s424_s30 = sadd.s32 3, %s1225_s10  ;;  %v405_v45 = vld [vmem:[%s1210_s14] ss:$4 sm:$0x3] }
  0x7e   : > { %v379_v36 = vmul.f32 %v378_v33, %v377_v24  ;;  %v382_v37 = vstv %s1245_s24  ;;  %v387_v42 = vstv %s1248_s9  ;;  %v668_v46 = vld [vmem:[%s1210_s14 + $0x1] ss:$4 sm:$0x3]  ;;  %v670_v54 = vld [vmem:[%s1210_s14 + $0x2] ss:$4 sm:$0x3] }
  0x7f   : > { %v336_v30 = vadd.f32 %v335_v15, %v330_v21  ;;  %v361_v40 = vadd.f32 %v360_v27, %v356_v31  ;;  %v383_v41 = vmul.f32 %v660_v29, %v382_v37  ;;  %v388_v43 = vmul.f32 %v662_v34, %v387_v42  ;;  %s1292_s25 = sld [smem:[#allocation9 + %s424_s30]]  ;;  %s1438_s10 = sshll.u32 %s1204_s15, 3  ;;  %v672_v59 = vld [vmem:[%s1210_s14 + $0x3] ss:$4 sm:$0x3] }
  0x80   : > { %v392_v44 = vstv %s1254_s12  ;;  %v370_v51 = vstv %s1252_s16  ;;  %v406_v52 = vstv %s1259_s26  ;;  %s1296_s13 = scalar_lea.vmem [#allocation11], %s1438_s10  ;;  %s642_s24 = sshll.u32 %s1204_s15, 2 }
  0x81   : > { %v338_v39 = vmul.f32 %v1261_v25, %v336_v30  ;;  %v366_v48 = vadd.f32 %v365_v32, %v361_v40  ;;  %v384_v49 = vadd.f32 %v383_v41, %v379_v36  ;;  %v393_v50 = vmul.f32 %v664_v38, %v392_v44  ;;  %s684_s14 = sshll.u32 %s975_s21, 7  ;;  %s457_s9 = sshll.u32 %s1296_s13, 4  ;;  %s1327_s9 = int_to_ptr.vmem [resolvable:$true] %s457_s9 }
  0x82   : > { %v410_v53 = vstv %s1269_s11  ;;  %v407_v57 = vmul.f32 %v406_v52, %v405_v45  ;;  %v415_v60 = vstv %s1273_s0  ;;  %v420_v61 = vstv %s1280_s7  ;;  %s1318_s16 = scalar_lea.vmem [#allocation12], %s642_s24  ;;  %s685_s28 = sshll.u32 %s975_s21, 6 }
  0x83   : > { %v342_v47 = vadd.f32 %v341_v35, %v338_v39  ;;  %v367_v55 = vmul.f32 %v366_v48, %v1261_v25  ;;  %v389_v56 = vadd.f32 %v388_v43, %v384_v49  ;;  %v411_v58 = vmul.f32 %v668_v46, %v410_v53  ;;  %s473_s12 = sshll.u32 %s1318_s16, 4  ;;  %s1325_s0 = scalar_lea.hbm %s1416_s4, %s684_s14  ;;  %s1329_s12 = int_to_ptr.vmem [resolvable:$true] %s473_s12 }
  0x84   : > { %v416_v1 = vmul.f32 %v670_v54, %v415_v60  ;;  %v398_v2 = vstv %s1278_s27  ;;  %v421_v3 = vmul.f32 %v672_v59, %v420_v61  ;;  %s1337_s7 = scalar_lea.hbm %s1417_s5, %s685_s28  ;;  %s436_s30 = scalar_lea.sflag [#allocation4], %s1204_s15 }
  0x85   : > { %347 = vst.msk [vmem:[%s1296_s13] ss:$4 sm:$0x3] %vm1263_vm0, %v342_v47  ;;  %v371_v62 = vadd.f32 %v370_v51, %v367_v55  ;;  %v394_v63 = vadd.f32 %v393_v50, %v389_v56  ;;  %v412_v0 = vadd.f32 %v411_v58, %v407_v57  ;;  %v426_v10 = vstv %s1292_s25  ;;  %s857_s25 = scalar_lea.vmem %s1327_s9, 128  ;;  %s989_s10 = smov [#allocation11]  }
  0x86   : > { %p858_p3 = scmp.ne.s32.totalorder %s1327_s9, %s857_s25  ;;  %s861_s24 = sshll.u32 %s989_s10, 4  ;;  %s862_s24 = int_to_ptr.vmem [resolvable:$false] %s861_s24 }
  0x87   : > { %657 = vst.msk [vmem:[%s1296_s13 + $0x1] ss:$4 sm:$0x3] %vm1263_vm0, %v371_v62  ;;  %v395_v4 = vmul.f32 %v394_v63, %v1261_v25  ;;  %v417_v5 = vadd.f32 %v416_v1, %v412_v0  ;;  %v374_v6 = vmax.f32 %v342_v47, %v371_v62  ;;  %v375_v7 = vmin.f32 %v342_v47, %v371_v62  ;;  %s863_s14 = scalar_lea.vmem %s862_s24, 256  ;;  %p864_p0 = scmp.lt.s32.totalorder %s1327_s9, %s862_s24 }
  0x88   : > { %p859_p6 = pnand %p858_p3, %p1439_p2  ;;  %p865_p11 = scmp.lt.s32.totalorder %s863_s14, %s857_s25 }
  0x89   : > { %v399_v8 = vadd.f32 %v398_v2, %v395_v4  ;;  %v422_v9 = vadd.f32 %v421_v3, %v417_v5 }
  0x8a   : > { %p860_p13 = pneg %p859_p6  ;;  %p866_p5 = por %p865_p11, %p864_p0 }
  0x8b   : > { %665 = vst.msk [vmem:[%s1296_s13 + $0x2] ss:$4 sm:$0x3] %vm1263_vm0, %v399_v8  ;;  %v423_v11 = vmul.f32 %v422_v9, %v1261_v25  ;;  %v402_v12 = vmax.f32 %v374_v6, %v399_v8  ;;  %v403_v13 = vmin.f32 %v375_v7, %v399_v8 }
  0x8c   : > { %p867_p7 = pnand %p866_p5, %p860_p13 }
  0x8d   : > { %v427_v14 = vadd.f32 %v426_v10, %v423_v11 }
  0x8f   : > { %673 = vst.msk [vmem:[%s1296_s13 + $0x3] ss:$4 sm:$0x3] %vm1263_vm0, %v427_v14  ;;  %v430_v15 = vmax.f32 %v402_v12, %v427_v14  ;;  %v431_v16 = vmin.f32 %v403_v13, %v427_v14 }
  0x90   : > { %870 = shalt.err (!%p867_p7)
}
  0x91   : > { %s871_s13 = scalar_lea.hbm %s1325_s0, 128  ;;  %s875_s11 = scalar_lea.hbm %s1416_s4, 256 }
  0x92   : > { %p872_p12 = scmp.ne.s32.totalorder %s1325_s0, %s871_s13  ;;  %p876_p9 = scmp.lt.u32.totalorder %s1325_s0, %s1416_s4 }
  0x93   : > { %p877_p10 = scmp.lt.u32.totalorder %s875_s11, %s871_s13  ;;  %p879_p3 = scmp.lt.u32.totalorder %s871_s13, %s1325_s0 }
  0x94   : > { %p873_p4 = pnand %p872_p12, %p1439_p2 }
  0x95   : > { %p878_p8 = por %p877_p10, %p876_p9 }
  0x96   : > { %p874_p1 = pneg %p873_p4 }
  0x97   : > { %p880_p6 = por %p879_p3, %p878_p8 }
  0x99   : > { %p881_p13 = pnand %p880_p6, %p874_p1 }
  0x9b   : > { %884 = shalt.err (!%p881_p13)
}
  0x9c   : > { %700 = dma.vmem_to_hbm [thread:$0]  (%p1439_p2), %s1327_s9, 128, %s1325_s0, %s436_s30   ;;  %432 = vst.msk [vmem:[%s1318_s16] ss:$2 sm:$0x3] %vm1263_vm0, %v430_v15 }
  0x9d   : > { %674 = vst.msk [vmem:[%s1318_s16 + $0x1] ss:$2 sm:$0x3] %vm1263_vm0, %v431_v16  ;;  %s441_s25 = scalar_lea.sflag [#allocation13], %s1204_s15  ;;  %s885_s10 = scalar_lea.vmem %s1329_s12, 64 }
  0x9e   : > { %p886_p0 = scmp.ne.s32.totalorder %s1329_s12, %s885_s10  ;;  %s990_s24 = smov [#allocation12]  }
  0x9f   : > { %s889_s14 = sshll.u32 %s990_s24, 4  ;;  %s890_s14 = int_to_ptr.vmem [resolvable:$false] %s889_s14 }
  0xa0   : > { %p887_p11 = pnand %p886_p0, %p1439_p2  ;;  %s891_s13 = scalar_lea.vmem %s890_s14, 128 }
  0xa1   : > { %p892_p7 = scmp.lt.s32.totalorder %s1329_s12, %s890_s14  ;;  %p893_p12 = scmp.lt.s32.totalorder %s891_s13, %s885_s10 }
  0xa2   : > { %p888_p5 = pneg %p887_p11 }
  0xa3   : > { %p894_p4 = por %p893_p12, %p892_p7 }
  0xa5   : > { %p895_p1 = pnand %p894_p4, %p888_p5 }
  0xa7   : > { %898 = shalt.err (!%p895_p1)
}
  0xa8   : > { %s899_s15 = scalar_lea.hbm %s1337_s7, 64  ;;  %s903_s0 = scalar_lea.hbm %s1417_s5, 128 }
  0xa9   : > { %p900_p9 = scmp.ne.s32.totalorder %s1337_s7, %s899_s15  ;;  %p904_p3 = scmp.lt.u32.totalorder %s1337_s7, %s1417_s5 }
  0xaa   : > { %p905_p6 = scmp.lt.u32.totalorder %s903_s0, %s899_s15  ;;  %p907_p0 = scmp.lt.u32.totalorder %s899_s15, %s1337_s7 }
  0xab   : > { %p901_p10 = pnand %p900_p9, %p1439_p2 }
  0xac   : > { %p906_p13 = por %p905_p6, %p904_p3 }
  0xad   : > { %p902_p8 = pneg %p901_p10 }
  0xae   : > { %p908_p11 = por %p907_p0, %p906_p13 }
  0xb0   : > { %p909_p5 = pnand %p908_p11, %p902_p8 }
  0xb2   : > { %912 = shalt.err (!%p909_p5)
}
  0xb3   : > { %701 = dma.vmem_to_hbm [thread:$0]  (%p1439_p2), %s1329_s12, 64, %s1337_s7, %s441_s25  }
  0xb4 PF: > { %s485_s26 = sand.u32 1, %s963_s18   ;;  %p1440_p7 = scmp.ne.s32.totalorder %s1427_s29, 0 }
  0xb5   : > { %p1441_p12 = scmp.ge.s32.totalorder %s983_s23, 2  ;;  %s486_s11 = scalar_lea.sflag [#allocation4], %s485_s26 }
  0xb7   : > { %p719_p4 = pnand %p1441_p12, %p1440_p7 }
  0xb9   : > { %954 = dma.done.wait (!%p719_p4), %s486_s11, 128  }
  0xba   : > { %956 = vsyncadd (!%p719_p4), %s486_s11, 4294967168  ;;  %s495_s27 = scalar_lea.sflag [#allocation13], %s485_s26 }
  0xbb   : > { %958 = dma.done.wait (!%p719_p4), %s495_s27, 64  }
  0xbc   : > { %960 = vsyncadd (!%p719_p4), %s495_s27, 4294967232  ;;  %s28_s23 = sadd.s32 1, %s983_s23   ;;  %s1442_s18 = smov %s967_s19 }
  0xbd   : > { %p25_p1 = scmp.ge.s32.totalorder %s28_s23, 4   ;;  %s1443_s19 = smov %s971_s20 }
  0xbe   : > { %s1444_s20 = smov %s1152_s6  ;;  %s1445_s21 = smov %s979_s22 }
  0xbf   : > { %s1446_s22 = smov %s1448_s8  ;;  %27 = sbr.rel (!%p25_p1) target bundleno = 13 (0xd), region = 119 }
  0xc6   :  { %500 = vsyncpa [#allocation3], 1 }
  0xc7   :  { %502 = vsyncpa [#allocation3 + $0x1], 1 }
  0xc8   :  { %503 = vsyncpa [#allocation4], 1 }
  0xc9   :  { %505 = vsyncpa [#allocation4 + $0x1], 1 }
  0xca   :  { %506 = vsyncpa [#allocation13], 1 }
  0xcb   :  { %508 = vsyncpa [#allocation13 + $0x1], 1 }
  0xcc   :  { %509 = vsyncpa [#allocation5], 1 }
  0xcd   :  { %511 = vsyncpa [#allocation5 + $0x1], 1 }
  0xce   :  { %512 = vsyncpa [#allocation6], 1 }
  0xcf   :  { %514 = vsyncpa [#allocation6 + $0x1], 1 }
  0xd0   :  { %515 = vsyncpa [#allocation10], 1 }

</bundles_post_ra>
